<compile_context>
chip_gen: v6e
topology: v6e:2x2x1
jax: 0.10.0
libtpu: 0.0.40
codegen_flags: <defaults>
</compile_context>

<pallas_src>
import functools

import jax
import jax.numpy as jnp
from jax import lax
from jax.experimental import pallas as pl
from jax.experimental.pallas import tpu as pltpu


def _conv_layer_kernel(x_ref, w_ref, scale_ref, shift_ref, o_ref, *, L, L_out, NB):
    """x_ref (NB, L, Cp) -> o_ref (NB, L_out, Cp)."""
    w = w_ref[...]                                   # (3*Cp, Cp), activation dtype
    scale = scale_ref[...]                           # (1, Cp), f32
    shift = shift_ref[...]                           # (1, Cp), f32
    cp = w.shape[-1]
    out_dtype = o_ref.dtype
    pad_rows = 2 * L_out - L                         # 0 if L even, 1 if L odd

    for n in range(NB):                              # small static unroll over batch
        x = x_ref[n]                                 # (L, Cp)

        # Circular neighbours along L (padding_mode='circular', pad=1), built on
        # the XLU so they do not burn vector load/store or VPU slots.
        x_m1 = pltpu.roll(x, shift=1, axis=0)        # x[(l-1) % L]
        x_p1 = pltpu.roll(x, shift=L - 1, axis=0)    # x[(l+1) % L]

        # Lane-axis im2col: one MXU matmul with K = 3*Cp, f32 accumulation.
        xc = jnp.concatenate([x_m1, x, x_p1], axis=-1)           # (L, 3*Cp)
        h = jnp.dot(xc, w, preferred_element_type=jnp.float32)   # (L, Cp) f32

        # Folded BatchNorm(eval) + conv bias, then ELU (alpha = 1).
        h = h * scale + shift
        # NOTE(review): expm1 would be marginally more precise near 0; exp(h)-1
        # kept for guaranteed Mosaic lowering (difference ~f32 eps, and the
        # branch is selected away for h > 0).
        h = jnp.where(h > 0.0, h, jnp.exp(h) - 1.0)
        h = h.astype(out_dtype)                      # shrink pool temps (2x for bf16)

        # MaxPool1d(k=3, stride=2, padding=1): window {2i-1, 2i, 2i+1}, OOB = -inf.
        if pad_rows:
            neg_row = jnp.full((pad_rows, cp), -jnp.inf, dtype=out_dtype)
            h = jnp.concatenate([h, neg_row], axis=0)            # (2*L_out, Cp)
        h2 = h.reshape(L_out, 2, cp)                 # row 2i -> [:,0], 2i+1 -> [:,1]
        even = h2[:, 0, :]                           # h[2i]
        odd = h2[:, 1, :]                            # h[2i+1]
        odd_prev = pltpu.roll(odd, shift=1, axis=0)  # h[2i-1] (wraps into row 0)
        row0 = lax.broadcasted_iota(jnp.int32, (L_out, cp), 0) == 0
        odd_prev = jnp.where(row0, -jnp.inf, odd_prev)           # mask the wrap

        o_ref[n] = jnp.maximum(jnp.maximum(even, odd), odd_prev).astype(out_dtype)


def conv_layer_forward(x, conv_w, conv_b, bn_gamma, bn_beta, bn_mean, bn_var,
                       *, eps=1e-5):
    """x: (B, L, C). conv_w: (C, C, 3) torch layout (out, in, k). Returns (B, L_out, C)."""
    B, L, C = x.shape
    assert L >= 2, "sequence length must be >= 2"
    L_out = (L - 1) // 2 + 1
    Cp = ((C + 127) // 128) * 128                    # lane-dense channel padding
    dtype = x.dtype
    itemsize = jnp.dtype(dtype).itemsize

    # Fold BN (eval, running stats) and conv bias into per-channel scale/shift (f32).
    inv_std = 1.0 / jnp.sqrt(bn_var.astype(jnp.float32) + eps)
    scale = bn_gamma.astype(jnp.float32) * inv_std                              # (C,)
    shift = (bn_beta.astype(jnp.float32)
             + (conv_b.astype(jnp.float32) - bn_mean.astype(jnp.float32)) * scale)

    # torch (co, ci, k) -> (k, ci, co); tap k multiplies x[l + k - 1].
    w = jnp.transpose(conv_w.astype(jnp.float32), (2, 1, 0))                    # (3, C, C)

    if Cp != C:
        # TODO(synk): for C << 128 this pad / final slice pair is an extra HBM pass
        # each way; fuse into the upstream producer / downstream consumer (or pack
        # channels of several batch elements) when it matters.
        x = jnp.pad(x, ((0, 0), (0, 0), (0, Cp - C)))
        w = jnp.pad(w, ((0, 0), (0, Cp - C), (0, Cp - C)))
        scale = jnp.pad(scale, (0, Cp - C))
        shift = jnp.pad(shift, (0, Cp - C))

    w = w.reshape(3 * Cp, Cp).astype(dtype)          # fused im2col weight, act dtype
    scale = scale.reshape(1, Cp)
    shift = shift.reshape(1, Cp)

    # Batch elements per grid step: amortize per-step overhead while keeping the
    # double-buffered in/out blocks comfortably inside VMEM.
    NB = 1
    for cand in (8, 4, 2):
        if B % cand == 0 and cand * (L + L_out) * Cp * itemsize * 2 <= (8 << 20):
            NB = cand
            break

    block_bytes = (2 * NB * (L + L_out) * Cp * itemsize      # double-buffered x / out
                   + 2 * 3 * Cp * Cp * itemsize              # resident weights
                   + 4 * 2 * Cp * 4)                         # scale / shift
    temp_bytes = 8 * L * Cp * 4                              # rolls, im2col, f32 h, pool
    vmem_limit = int(min(max(block_bytes + temp_bytes + (4 << 20), 32 << 20), 56 << 20))

    kernel = functools.partial(_conv_layer_kernel, L=L, L_out=L_out, NB=NB)

    out = pl.pallas_call(
        kernel,
        out_shape=jax.ShapeDtypeStruct((B, L_out, Cp), dtype),
        grid_spec=pltpu.PrefetchScalarGridSpec(
            num_scalar_prefetch=0,
            grid=(B // NB,),
            in_specs=[
                pl.BlockSpec((NB, L, Cp), lambda b: (b, 0, 0)),      # activations
                pl.BlockSpec((3 * Cp, Cp), lambda b: (0, 0)),        # conv taps (resident)
                pl.BlockSpec((1, Cp), lambda b: (0, 0)),             # BN scale (resident)
                pl.BlockSpec((1, Cp), lambda b: (0, 0)),             # BN shift (resident)
            ],
            out_specs=pl.BlockSpec((NB, L_out, Cp), lambda b: (b, 0, 0)),
        ),
        compiler_params=pltpu.CompilerParams(
            dimension_semantics=("parallel",),       # shard batch across TCs (v7x)
            vmem_limit_bytes=vmem_limit,
        ),
    )(x, w, scale, shift)

    return out[:, :, :C]


def conv_layer_ref(x, conv_w, conv_b, bn_gamma, bn_beta, bn_mean, bn_var, *, eps=1e-5):
    """Pure-JAX reference mirroring the PyTorch module (eval-mode BN)."""
    B, L, C = x.shape
    xt = jnp.transpose(x, (0, 2, 1)).astype(jnp.float32)                 # (B, C, L)
    xp = jnp.concatenate([xt[:, :, -1:], xt, xt[:, :, :1]], axis=-1)     # circular pad=1
    h = jnp.zeros((B, C, L), jnp.float32)
    for k in range(3):
        h = h + jnp.einsum("oi,bil->bol",
                           conv_w[:, :, k].astype(jnp.float32), xp[:, :, k:k + L])
    h = h + conv_b.astype(jnp.float32)[None, :, None]
    scale = (bn_gamma / jnp.sqrt(bn_var + eps)).astype(jnp.float32)
    h = (h - bn_mean[None, :, None]) * scale[None, :, None] + bn_beta[None, :, None]
    h = jnp.where(h > 0.0, h, jnp.exp(h) - 1.0)                          # ELU
    pooled = lax.reduce_window(h, -jnp.inf, lax.max,
                               window_dimensions=(1, 1, 3),
                               window_strides=(1, 1, 2),
                               padding=((0, 0), (0, 0), (1, 1)))
    return jnp.transpose(pooled, (0, 2, 1))                              # (B, L_out, C)


if __name__ == "__main__":
    batch, seq, c_in = 2, 16, 32

    key = jax.random.PRNGKey(0)
    k_x, k_w, k_b, k_g, k_bt, k_m, k_v = jax.random.split(key, 7)

    x = jax.random.normal(k_x, (batch, seq, c_in), dtype=jnp.float32)
    conv_w = jax.random.normal(k_w, (c_in, c_in, 3), dtype=jnp.float32) * 0.1
    conv_b = jax.random.normal(k_b, (c_in,), dtype=jnp.float32) * 0.1
    bn_gamma = 1.0 + 0.1 * jax.random.normal(k_g, (c_in,), dtype=jnp.float32)
    bn_beta = 0.1 * jax.random.normal(k_bt, (c_in,), dtype=jnp.float32)
    bn_mean = 0.1 * jax.random.normal(k_m, (c_in,), dtype=jnp.float32)
    bn_var = jnp.abs(jax.random.normal(k_v, (c_in,), dtype=jnp.float32)) + 0.5

    out = conv_layer_forward(x, conv_w, conv_b, bn_gamma, bn_beta, bn_mean, bn_var)
    out = jax.block_until_ready(out)

    ref = conv_layer_ref(x, conv_w, conv_b, bn_gamma, bn_beta, bn_mean, bn_var)
    ref = jax.block_until_ready(ref)

    L_out = (seq - 1) // 2 + 1
    assert out.shape == (batch, L_out, c_in), out.shape
    assert jnp.allclose(out, ref, atol=1e-4, rtol=1e-4), float(jnp.max(jnp.abs(out - ref)))

    print("KERNEL_OK")
</pallas_src>

<mosaic_0001>
module attributes {stable_mosaic.version = 11 : i64} {
  func.func @_conv_layer_kernel(%arg0: i32, %arg1: memref<2x16x128xf32, #tpu.memory_space<vmem>>, %arg2: memref<384x128xf32, #tpu.memory_space<vmem>>, %arg3: memref<1x128xf32, #tpu.memory_space<vmem>>, %arg4: memref<1x128xf32, #tpu.memory_space<vmem>>, %arg5: memref<2x8x128xf32, #tpu.memory_space<vmem>>) attributes {dimension_semantics = [#tpu.dimension_semantics<parallel>], iteration_bounds = array<i64: 1>, scalar_prefetch = 0 : i64, scratch_operands = 0 : i64, tpu.core_type = #tpu.core_type<tc>, window_params = [{transform_indices = @transform_0, window_bounds = array<i64: 2, 16, 128>}, {pipeline_mode = #tpu.pipeline_mode<synchronous>, transform_indices = @transform_1, window_bounds = array<i64: 384, 128>}, {pipeline_mode = #tpu.pipeline_mode<synchronous>, transform_indices = @transform_2, window_bounds = array<i64: 1, 128>}, {pipeline_mode = #tpu.pipeline_mode<synchronous>, transform_indices = @transform_3, window_bounds = array<i64: 1, 128>}, {transform_indices = @transform_4, window_bounds = array<i64: 2, 8, 128>}]} {
    %c0 = arith.constant 0 : index
    %c0_0 = arith.constant 0 : index
    %0 = vector.load %arg2[%c0, %c0_0] : memref<384x128xf32, #tpu.memory_space<vmem>>, vector<384x128xf32>
    %c0_1 = arith.constant 0 : index
    %c0_2 = arith.constant 0 : index
    %1 = vector.load %arg3[%c0_1, %c0_2] : memref<1x128xf32, #tpu.memory_space<vmem>>, vector<1x128xf32>
    %c0_3 = arith.constant 0 : index
    %c0_4 = arith.constant 0 : index
    %2 = vector.load %arg4[%c0_3, %c0_4] : memref<1x128xf32, #tpu.memory_space<vmem>>, vector<1x128xf32>
    %c0_5 = arith.constant 0 : index
    %c0_6 = arith.constant 0 : index
    %c0_7 = arith.constant 0 : index
    %3 = vector.load %arg1[%c0_5, %c0_6, %c0_7] : memref<2x16x128xf32, #tpu.memory_space<vmem>>, vector<1x16x128xf32>
    %4 = vector.shape_cast %3 : vector<1x16x128xf32> to vector<16x128xf32>
    %c1_i32 = arith.constant 1 : i32
    %5 = tpu.dynamic_rotate %4 by %c1_i32 dim 0 : vector<16x128xf32>, i32 -> vector<16x128xf32>
    %c15_i32 = arith.constant 15 : i32
    %6 = tpu.dynamic_rotate %4 by %c15_i32 dim 0 : vector<16x128xf32>, i32 -> vector<16x128xf32>
    %7 = tpu.concatenate %5, %4, %6 in 1 : vector<16x128xf32>, vector<16x128xf32>, vector<16x128xf32> -> vector<16x384xf32>
    %cst = arith.constant dense<0.000000e+00> : vector<16x128xf32>
    %8 = tpu.matmul %7, %0, %cst {dimension_numbers = #tpu.dot_dimension_numbers<[1], [0], [0], [1], [0, 0, 1, 1], [], []>} : vector<16x384xf32>, vector<384x128xf32>, vector<16x128xf32> -> vector<16x128xf32>
    %9 = vector.broadcast %1 : vector<1x128xf32> to vector<16x128xf32>
    %10 = arith.mulf %8, %9 : vector<16x128xf32>
    %11 = vector.broadcast %2 : vector<1x128xf32> to vector<16x128xf32>
    %12 = arith.addf %10, %11 : vector<16x128xf32>
    %cst_8 = arith.constant 0.000000e+00 : f32
    %13 = vector.broadcast %cst_8 : f32 to vector<16x128xf32>
    %14 = arith.cmpf ogt, %12, %13 : vector<16x128xf32>
    %15 = math.exp %12 : vector<16x128xf32>
    %cst_9 = arith.constant 1.000000e+00 : f32
    %16 = vector.broadcast %cst_9 : f32 to vector<16x128xf32>
    %17 = arith.subf %15, %16 : vector<16x128xf32>
    %18 = arith.select %14, %12, %17 : vector<16x128xi1>, vector<16x128xf32>
    %19 = vector.shape_cast %18 : vector<16x128xf32> to vector<8x2x128xf32>
    %20 = vector.extract_strided_slice %19 {offsets = [0, 0, 0], sizes = [8, 1, 128], strides = [1, 1, 1]} : vector<8x2x128xf32> to vector<8x1x128xf32>
    %21 = vector.shape_cast %20 : vector<8x1x128xf32> to vector<8x128xf32>
    %22 = vector.extract_strided_slice %19 {offsets = [0, 1, 0], sizes = [8, 1, 128], strides = [1, 1, 1]} : vector<8x2x128xf32> to vector<8x1x128xf32>
    %23 = vector.shape_cast %22 : vector<8x1x128xf32> to vector<8x128xf32>
    %c1_i32_10 = arith.constant 1 : i32
    %24 = tpu.dynamic_rotate %23 by %c1_i32_10 dim 0 : vector<8x128xf32>, i32 -> vector<8x128xf32>
    %25 = tpu.iota {dimensions = array<i32: 0>} : vector<8x128xi32>
    %c0_i32 = arith.constant 0 : i32
    %26 = vector.broadcast %c0_i32 : i32 to vector<8x128xi32>
    %27 = arith.cmpi eq, %25, %26 : vector<8x128xi32>
    %cst_11 = arith.constant 0xFF800000 : f32
    %28 = vector.broadcast %cst_11 : f32 to vector<8x128xf32>
    %29 = arith.select %27, %28, %24 : vector<8x128xi1>, vector<8x128xf32>
    %30 = arith.maximumf %21, %23 : vector<8x128xf32>
    %31 = arith.maximumf %30, %29 : vector<8x128xf32>
    %c0_12 = arith.constant 0 : index
    %c0_13 = arith.constant 0 : index
    %c0_14 = arith.constant 0 : index
    %32 = vector.load %arg5[%c0_12, %c0_13, %c0_14] : memref<2x8x128xf32, #tpu.memory_space<vmem>>, vector<1x8x128xf32>
    %33 = vector.shape_cast %32 : vector<1x8x128xf32> to vector<8x128xf32>
    %34 = vector.shape_cast %31 : vector<8x128xf32> to vector<1x8x128xf32>
    tpu.vector_store %arg5[%c0_12, %c0_13, %c0_14], %34 {strides = array<i32>} : memref<2x8x128xf32, #tpu.memory_space<vmem>>, vector<1x8x128xf32>,
    %c1 = arith.constant 1 : index
    %c0_15 = arith.constant 0 : index
    %c0_16 = arith.constant 0 : index
    %35 = vector.load %arg1[%c1, %c0_15, %c0_16] : memref<2x16x128xf32, #tpu.memory_space<vmem>>, vector<1x16x128xf32>
    %36 = vector.shape_cast %35 : vector<1x16x128xf32> to vector<16x128xf32>
    %c1_i32_17 = arith.constant 1 : i32
    %37 = tpu.dynamic_rotate %36 by %c1_i32_17 dim 0 : vector<16x128xf32>, i32 -> vector<16x128xf32>
    %c15_i32_18 = arith.constant 15 : i32
    %38 = tpu.dynamic_rotate %36 by %c15_i32_18 dim 0 : vector<16x128xf32>, i32 -> vector<16x128xf32>
    %39 = tpu.concatenate %37, %36, %38 in 1 : vector<16x128xf32>, vector<16x128xf32>, vector<16x128xf32> -> vector<16x384xf32>
    %cst_19 = arith.constant dense<0.000000e+00> : vector<16x128xf32>
    %40 = tpu.matmul %39, %0, %cst_19 {dimension_numbers = #tpu.dot_dimension_numbers<[1], [0], [0], [1], [0, 0, 1, 1], [], []>} : vector<16x384xf32>, vector<384x128xf32>, vector<16x128xf32> -> vector<16x128xf32>
    %41 = vector.broadcast %1 : vector<1x128xf32> to vector<16x128xf32>
    %42 = arith.mulf %40, %41 : vector<16x128xf32>
    %43 = vector.broadcast %2 : vector<1x128xf32> to vector<16x128xf32>
    %44 = arith.addf %42, %43 : vector<16x128xf32>
    %cst_20 = arith.constant 0.000000e+00 : f32
    %45 = vector.broadcast %cst_20 : f32 to vector<16x128xf32>
    %46 = arith.cmpf ogt, %44, %45 : vector<16x128xf32>
    %47 = math.exp %44 : vector<16x128xf32>
    %cst_21 = arith.constant 1.000000e+00 : f32
    %48 = vector.broadcast %cst_21 : f32 to vector<16x128xf32>
    %49 = arith.subf %47, %48 : vector<16x128xf32>
    %50 = arith.select %46, %44, %49 : vector<16x128xi1>, vector<16x128xf32>
    %51 = vector.shape_cast %50 : vector<16x128xf32> to vector<8x2x128xf32>
    %52 = vector.extract_strided_slice %51 {offsets = [0, 0, 0], sizes = [8, 1, 128], strides = [1, 1, 1]} : vector<8x2x128xf32> to vector<8x1x128xf32>
    %53 = vector.shape_cast %52 : vector<8x1x128xf32> to vector<8x128xf32>
    %54 = vector.extract_strided_slice %51 {offsets = [0, 1, 0], sizes = [8, 1, 128], strides = [1, 1, 1]} : vector<8x2x128xf32> to vector<8x1x128xf32>
    %55 = vector.shape_cast %54 : vector<8x1x128xf32> to vector<8x128xf32>
    %c1_i32_22 = arith.constant 1 : i32
    %56 = tpu.dynamic_rotate %55 by %c1_i32_22 dim 0 : vector<8x128xf32>, i32 -> vector<8x128xf32>
    %57 = tpu.iota {dimensions = array<i32: 0>} : vector<8x128xi32>
    %c0_i32_23 = arith.constant 0 : i32
    %58 = vector.broadcast %c0_i32_23 : i32 to vector<8x128xi32>
    %59 = arith.cmpi eq, %57, %58 : vector<8x128xi32>
    %cst_24 = arith.constant 0xFF800000 : f32
    %60 = vector.broadcast %cst_24 : f32 to vector<8x128xf32>
    %61 = arith.select %59, %60, %56 : vector<8x128xi1>, vector<8x128xf32>
    %62 = arith.maximumf %53, %55 : vector<8x128xf32>
    %63 = arith.maximumf %62, %61 : vector<8x128xf32>
    %c1_25 = arith.constant 1 : index
    %c0_26 = arith.constant 0 : index
    %c0_27 = arith.constant 0 : index
    %64 = vector.load %arg5[%c1_25, %c0_26, %c0_27] : memref<2x8x128xf32, #tpu.memory_space<vmem>>, vector<1x8x128xf32>
    %65 = vector.shape_cast %64 : vector<1x8x128xf32> to vector<8x128xf32>
    %66 = vector.shape_cast %63 : vector<8x128xf32> to vector<1x8x128xf32>
    tpu.vector_store %arg5[%c1_25, %c0_26, %c0_27], %66 {strides = array<i32>} : memref<2x8x128xf32, #tpu.memory_space<vmem>>, vector<1x8x128xf32>,
    return
  }
  func.func @transform_0(%arg0: i32) -> (i32, i32, i32) {
    %c0_i32 = arith.constant 0 : i32
    %c0_i32_0 = arith.constant 0 : i32
    %c0_i32_1 = arith.constant 0 : i32
    return %arg0, %c0_i32, %c0_i32_0 : i32, i32, i32
  }
  func.func @transform_1(%arg0: i32) -> (i32, i32) {
    %c0_i32 = arith.constant 0 : i32
    %c0_i32_0 = arith.constant 0 : i32
    %c0_i32_1 = arith.constant 0 : i32
    return %c0_i32, %c0_i32_0 : i32, i32
  }
  func.func @transform_2(%arg0: i32) -> (i32, i32) {
    %c0_i32 = arith.constant 0 : i32
    %c0_i32_0 = arith.constant 0 : i32
    %c0_i32_1 = arith.constant 0 : i32
    return %c0_i32, %c0_i32_0 : i32, i32
  }
  func.func @transform_3(%arg0: i32) -> (i32, i32) {
    %c0_i32 = arith.constant 0 : i32
    %c0_i32_0 = arith.constant 0 : i32
    %c0_i32_1 = arith.constant 0 : i32
    return %c0_i32, %c0_i32_0 : i32, i32
  }
  func.func @transform_4(%arg0: i32) -> (i32, i32, i32) {
    %c0_i32 = arith.constant 0 : i32
    %c0_i32_0 = arith.constant 0 : i32
    %c0_i32_1 = arith.constant 0 : i32
    return %arg0, %c0_i32, %c0_i32_0 : i32, i32, i32
  }
}

</mosaic_0001>

<bundles_post_ra>
// kernel: tpu_custom_call.1
= control target key start
LH: loop header
LB: loop body
LE: loop exit
PB: predicated region body
PF: predicated region fallthrough
CT: control target
= control target key end

     0   :  { %9 = vsyncpa [#allocation3], 0  ;;  %s1584_s0 = inlined_call_operand.hbm [shape: f32[2,16,128], index: 0, kind: input, shape index: {}]   ;;  %s1585_s1 = inlined_call_operand.hbm [shape: f32[384,128], index: 1, kind: input, shape index: {}]   ;;  %s1586_s2 = inlined_call_operand.vmem [shape: f32[1,128], index: 2, kind: input, shape index: {}]   ;;  %s1587_s3 = inlined_call_operand.vmem [shape: f32[1,128], index: 3, kind: input, shape index: {}]   ;;  %s1588_s4 = inlined_call_operand.hbm [shape: f32[2,8,128], index: 4, kind: output, shape index: {}]  }
   0x1   :  { %10 = vsyncpa [#allocation6], 0 }
   0x2   :  { %11 = vsyncpa [#allocation4], 0  ;;  %s1182_s15 = smov [#allocation2]  }
   0x3   :  { %s17_s16 = sshll.u32 %s1182_s15, 4  ;;  %s18_s16 = int_to_ptr.vmem [resolvable:$true] %s17_s16 }
   0x4   :  { %s1124_s17 = scalar_lea.vmem %s18_s16, 512  ;;  %p1129_p1 = scmp.lt.s32.totalorder %s18_s16, %s18_s16 }
   0x5   :  { %p1125_p0 = scmp.ne.s32.totalorder %s18_s16, %s1124_s17  ;;  %p1130_p2 = scmp.lt.s32.totalorder %s1124_s17, %s1124_s17 }
   0x7   :  { %p1131_p3 = por %p1130_p2, %p1129_p1 }
   0x9   :  { %p1132_p4 = pnand %p1131_p3, %p1125_p0 }
   0xb   :  { %1135 = shalt.err (!%p1132_p4)
}
   0xc   :  { %s1183_s18 = smov 128   ;;  %s1184_s19 = smov 8  }
   0xd   :  { %23 = dma.hbm_to_vmem [thread:$0]  %s1584_s0, 512, %s18_s16, [#allocation3], %s1183_s18, %s1183_s18, %s1184_s19  }
   0xe   :  { %s1185_s22 = smov [#allocation5]  }
   0xf   :  { %s29_s23 = sshll.u32 %s1185_s22, 4  ;;  %s30_s23 = int_to_ptr.vmem [resolvable:$true] %s29_s23 }
  0x10   :  { %s1144_s24 = scalar_lea.vmem %s30_s23, 6144  ;;  %p1149_p6 = scmp.lt.s32.totalorder %s30_s23, %s30_s23 }
  0x11   :  { %p1145_p5 = scmp.ne.s32.totalorder %s30_s23, %s1144_s24  ;;  %p1150_p7 = scmp.lt.s32.totalorder %s1144_s24, %s1144_s24 }
  0x13   :  { %p1151_p8 = por %p1150_p7, %p1149_p6 }
  0x15   :  { %p1152_p9 = pnand %p1151_p8, %p1145_p5 }
  0x17   :  { %1155 = shalt.err (!%p1152_p9)
}
  0x18   :  { %35 = dma.hbm_to_vmem [thread:$0]  %s1585_s1, 6144, %s30_s23, [#allocation6], %s1183_s18, %s1183_s18, %s1184_s19  }
  0x19   :  { %1176 = dma.done.wait [#allocation3], 512  }
  0x1a   :  { %1177 = vsyncadd [#allocation3], 4294966784 }
  0x1b   :  { %1178 = dma.done.wait [#allocation6], 6144  }
  0x1c   :  { %1179 = vsyncadd [#allocation6], 4294961152  ;;  %v1225_v0 = vld [vmem:[#allocation5 + $0xf8] sm:$0xff]  ;;  %v1233_v3 = vld [vmem:[#allocation5 + $0xf0] sm:$0xff]  ;;  %v100_v33 = vlaneseq  ;;  %vm362_vm4 = vcmask 1041409   ;;  %vm364_vm5 = vcmask 1042434  }
  0x1d   :  { %v1227_v1 = vld [vmem:[#allocation5 + $0x178] sm:$0xff]  ;;  %920 = vmatprep.subr.mxu0 %v1225_v0  ;;  %v1235_v4 = vld [vmem:[#allocation5 + $0x170] sm:$0xff]  ;;  %v1241_v6 = vld [vmem:[#allocation5 + $0xe8] sm:$0xff]  ;;  %vm366_vm6 = vcmask 1043459   ;;  %vm368_vm7 = vcmask 1044484   ;;  %vm370_vm8 = vcmask 1045509  }
  0x1e   :  { %v1229_v2 = vld [vmem:[#allocation5 + $0x78] sm:$0xff]  ;;  %1032 = vmatprep.subr.mxu1 %v1227_v1  ;;  %v1237_v5 = vld [vmem:[#allocation5 + $0x70] sm:$0xff]  ;;  %v1243_v7 = vld [vmem:[#allocation5 + $0x168] sm:$0xff]  ;;  %v1349_v42 = vshrl.u32 %v100_v33, 7  ;;  %vm372_vm9 = vcmask 1046534   ;;  %vm374_vm10 = vcmask 1047559  }
  0x1f   :  { %921 = vmatpush3.msra.mxu0 %v1229_v2  ;;  %1033 = vmatpush3.msra.mxu1 %v1227_v1  ;;  %v1247_v8 = vld [vmem:[#allocation5 + $0x68] sm:$0xff]  ;;  %v1251_v9 = vld [vmem:[#allocation5 + $0xe0] sm:$0xff]  ;;  %v1261_v12 = vld [vmem:[#allocation5 + $0xd8] sm:$0xff] }
  0x20   :  { %922 = vmatprep.subr.mxu0 %v1233_v3  ;;  %1034 = vmatprep.subr.mxu1 %v1235_v4  ;;  %v1253_v10 = vld [vmem:[#allocation5 + $0x160] sm:$0xff]  ;;  %v1263_v13 = vld [vmem:[#allocation5 + $0x158] sm:$0xff]  ;;  %v1271_v15 = vld [vmem:[#allocation5 + $0xd0] sm:$0xff]  ;;  %vm102_vm0 = vcmp.lt.s32.totalorder %v1349_v42, 1  ;;  %vm107_vm1 = vcmp.lt.s32.totalorder %v1349_v42, 7  ;;  %v1488_v33 = vsub.s32 1, %v1349_v42 }
  0x21   :  { %923 = vmatpush3.msra.mxu0 %v1237_v5  ;;  %1035 = vmatpush3.msra.mxu1 %v1235_v4  ;;  %v1257_v11 = vld [vmem:[#allocation5 + $0x60] sm:$0xff]  ;;  %v1267_v14 = vld [vmem:[#allocation5 + $0x58] sm:$0xff]  ;;  %v1273_v16 = vld [vmem:[#allocation5 + $0x150] sm:$0xff]  ;;  %vm378_vm11 = vcmp.eq.s32.totalorder %v1349_v42, 0 }
  0x22   :  { %924 = vmatprep.subr.mxu0 %v1241_v6  ;;  %1036 = vmatprep.subr.mxu1 %v1243_v7  ;;  %v1277_v17 = vld [vmem:[#allocation5 + $0x50] sm:$0xff]  ;;  %v1281_v18 = vld [vmem:[#allocation5 + $0xc8] sm:$0xff]  ;;  %v1291_v21 = vld [vmem:[#allocation5 + $0xc0] sm:$0xff] }
  0x23   :  { %925 = vmatpush3.msra.mxu0 %v1247_v8  ;;  %1037 = vmatpush3.msra.mxu1 %v1243_v7  ;;  %v1283_v19 = vld [vmem:[#allocation5 + $0x148] sm:$0xff]  ;;  %v1293_v22 = vld [vmem:[#allocation5 + $0x140] sm:$0xff]  ;;  %v1301_v24 = vld [vmem:[#allocation5 + $0xb8] sm:$0xff] }
  0x24   :  { %926 = vmatprep.subr.mxu0 %v1251_v9  ;;  %1038 = vmatprep.subr.mxu1 %v1253_v10  ;;  %v1287_v20 = vld [vmem:[#allocation5 + $0x48] sm:$0xff]  ;;  %v1297_v23 = vld [vmem:[#allocation5 + $0x40] sm:$0xff]  ;;  %v1303_v25 = vld [vmem:[#allocation5 + $0x138] sm:$0xff] }
  0x25   :  { %927 = vmatpush3.msra.mxu0 %v1257_v11  ;;  %1039 = vmatpush3.msra.mxu1 %v1253_v10  ;;  %v1307_v26 = vld [vmem:[#allocation5 + $0x38] sm:$0xff]  ;;  %v1311_v27 = vld [vmem:[#allocation5 + $0xb0] sm:$0xff]  ;;  %v1321_v30 = vld [vmem:[#allocation5 + $0xa8] sm:$0xff] }
  0x26   :  { %928 = vmatprep.subr.mxu0 %v1261_v12  ;;  %1040 = vmatprep.subr.mxu1 %v1263_v13  ;;  %v1313_v28 = vld [vmem:[#allocation5 + $0x130] sm:$0xff]  ;;  %v1323_v31 = vld [vmem:[#allocation5 + $0x128] sm:$0xff]  ;;  %v1331_v34 = vld [vmem:[#allocation5 + $0xa0] sm:$0xff] }
  0x27   :  { %929 = vmatpush3.msra.mxu0 %v1267_v14  ;;  %1041 = vmatpush3.msra.mxu1 %v1263_v13  ;;  %v1317_v29 = vld [vmem:[#allocation5 + $0x30] sm:$0xff]  ;;  %v1327_v32 = vld [vmem:[#allocation5 + $0x28] sm:$0xff]  ;;  %v1333_v35 = vld [vmem:[#allocation5 + $0x120] sm:$0xff] }
  0x28   :  { %930 = vmatprep.subr.mxu0 %v1271_v15  ;;  %1042 = vmatprep.subr.mxu1 %v1273_v16  ;;  %v1337_v36 = vld [vmem:[#allocation5 + $0x20] sm:$0xff]  ;;  %v1341_v37 = vld [vmem:[#allocation5 + $0x98] sm:$0xff]  ;;  %v97_v41 = vld [vmem:[#allocation2 + $0x8] sm:$0xff] }
  0x29   :  { %931 = vmatpush3.msra.mxu0 %v1277_v17  ;;  %1043 = vmatpush3.msra.mxu1 %v1273_v16  ;;  %v1343_v38 = vld [vmem:[#allocation5 + $0x118] sm:$0xff]  ;;  %v96_v40 = vld [vmem:[#allocation2] sm:$0xff]  ;;  %v1353_v43 = vld [vmem:[#allocation5 + $0x90] sm:$0xff]  ;;  %v99_v49 = vrot.slane %v97_v41, 7  ;;  %v106_v52 = vrot.slane %v97_v41, 1 }
  0x2a   :  { %932 = vmatprep.subr.mxu0 %v1281_v18  ;;  %1044 = vmatprep.subr.mxu1 %v1283_v19  ;;  %v1347_v39 = vld [vmem:[#allocation5 + $0x18] sm:$0xff]  ;;  %v1355_v44 = vld [vmem:[#allocation5 + $0x110] sm:$0xff]  ;;  %v1363_v46 = vld [vmem:[#allocation5 + $0x88] sm:$0xff]  ;;  %v98_v48 = vrot.slane %v96_v40, 7  ;;  %v105_v51 = vrot.slane %v96_v40, 1 }
  0x2b   :  { %933 = vmatpush3.msra.mxu0 %v1287_v20  ;;  %1045 = vmatpush3.msra.mxu1 %v1283_v19  ;;  %v1359_v45 = vld [vmem:[#allocation5 + $0x10] sm:$0xff]  ;;  %v1365_v47 = vld [vmem:[#allocation5 + $0x108] sm:$0xff]  ;;  %v1374_v53 = vld [vmem:[#allocation5 + $0x80] sm:$0xff] }
  0x2c   :  { %934 = vmatprep.subr.mxu0 %v1291_v21  ;;  %1046 = vmatprep.subr.mxu1 %v1293_v22  ;;  %v1369_v50 = vld [vmem:[#allocation5 + $0x8] sm:$0xff]  ;;  %v1376_v54 = vld [vmem:[#allocation5 + $0x100] sm:$0xff]  ;;  %v104_v56 = vsel %vm102_vm0, %v99_v49, %v98_v48  ;;  %v108_v57 = vsel %vm107_vm1, %v105_v51, %v106_v52  ;;  %v109_v58 = vsel %vm107_vm1, %v106_v52, %v105_v51  ;;  %v500_v60 = vld [vmem:[#allocation2 + $0x10] sm:$0xff] }
  0x2d   :  { %935 = vmatpush3.msra.mxu0 %v1297_v23  ;;  %1047 = vmatpush3.msra.mxu1 %v1293_v22  ;;  %v1381_v55 = vld [vmem:[#allocation5] sm:$0xff]  ;;  %v103_v59 = vsel %vm102_vm0, %v98_v48, %v99_v49  ;;  %v501_v61 = vld [vmem:[#allocation2 + $0x18] sm:$0xff]  ;;  %v506_v62 = vrot.slane %v500_v60, 1 }
  0x2e   :  { %936 = vmatprep.subr.mxu0 %v1301_v24  ;;  %1048 = vmatprep.subr.mxu1 %v1303_v25  ;;  %v507_v63 = vrot.slane %v501_v61, 1 }
  0x2f   :  { %937 = vmatpush3.msra.mxu0 %v1307_v26  ;;  %1049 = vmatpush3.msra.mxu1 %v1303_v25 }
  0x30   :  { %938 = vmatprep.subr.mxu0 %v1311_v27  ;;  %1050 = vmatprep.subr.mxu1 %v1313_v28 }
  0x31   :  { %939 = vmatpush3.msra.mxu0 %v1317_v29  ;;  %1051 = vmatpush3.msra.mxu1 %v1313_v28 }
  0x32   :  { %940 = vmatprep.subr.mxu0 %v1321_v30  ;;  %1052 = vmatprep.subr.mxu1 %v1323_v31 }
  0x33   :  { %941 = vmatpush3.msra.mxu0 %v1327_v32  ;;  %1053 = vmatpush3.msra.mxu1 %v1323_v31 }
  0x34   :  { %942 = vmatprep.subr.mxu0 %v1331_v34  ;;  %1054 = vmatprep.subr.mxu1 %v1333_v35 }
  0x35   :  { %943 = vmatpush3.msra.mxu0 %v1337_v36  ;;  %1055 = vmatpush3.msra.mxu1 %v1333_v35 }
  0x36   :  { %944 = vmatprep.subr.mxu0 %v1341_v37  ;;  %1056 = vmatprep.subr.mxu1 %v1343_v38 }
  0x37   :  { %945 = vmatpush3.msra.mxu0 %v1347_v39  ;;  %1057 = vmatpush3.msra.mxu1 %v1343_v38 }
  0x38   :  { %946 = vmatprep.subr.mxu0 %v1353_v43  ;;  %1058 = vmatprep.subr.mxu1 %v1355_v44 }
  0x39   :  { %947 = vmatpush3.msra.mxu0 %v1359_v45  ;;  %1059 = vmatpush3.msra.mxu1 %v1355_v44 }
  0x3a   :  { %948 = vmatprep.subr.mxu0 %v1363_v46  ;;  %1060 = vmatprep.subr.mxu1 %v1365_v47 }
  0x3b   :  { %949 = vmatpush3.msra.mxu0 %v1369_v50  ;;  %1061 = vmatpush3.msra.mxu1 %v1365_v47 }
  0x3c   :  { %950 = vmatprep.subr.mxu0 %v1374_v53  ;;  %1062 = vmatprep.subr.mxu1 %v1376_v54 }
  0x3d   :  { %951 = vmatpush3.msra.mxu0 %v1381_v55  ;;  %174 = vmatprep.mubr.f32.mxu0 %v96_v40 }
  0x3e   :  { %1063 = vmatpush3.msra.mxu1 %v1376_v54  ;;  %175 = vmatmul.mubr.f32.vlgmr.msra.gmra.mxu0 %v104_v56 }
  0x3f   :  { %1064 = vmatprep.mubr.f32.mxu1 %v108_v57  ;;  %976 = vmatprep.subr.mxu0 %v1225_v0  ;;  %v502_v0 = vrot.slane %v500_v60, 7 }
  0x40   :  { %1067 = vmatprep.subr.mxu1 %v1227_v1  ;;  %1065 = vmatmul.mubr.f32.vlgmr.msra.gmra.mxu1 %v109_v58 }
  0x41   :  { %977 = vmatpush3.msra.mxu0 %v1229_v2  ;;  %1068 = vmatpush3.msra.mxu1 %v1227_v1  ;;  %v503_v1 = vrot.slane %v501_v61, 7  ;;  %v508_v2 = vsel %vm107_vm1, %v506_v62, %v507_v63 }
  0x42   :  { %978 = vmatprep.subr.mxu0 %v1233_v3  ;;  %1069 = vmatprep.subr.mxu1 %v1235_v4 }
  0x43   :  { %179 = vmatprep.mubr.f32.mxu0 %v97_v41  ;;  %979 = vmatpush3.msra.mxu0 %v1237_v5  ;;  %v505_v3 = vsel %vm102_vm0, %v503_v1, %v502_v0  ;;  %v504_v5 = vsel %vm102_vm0, %v502_v0, %v503_v1 }
  0x44   :  { %1070 = vmatpush3.msra.mxu1 %v1235_v4  ;;  %180 = vmatmul.mubr.f32.gmra.mxu0 %v103_v59  ;;  %v509_v4 = vsel %vm107_vm1, %v507_v63, %v506_v62 }
  0x45   :  { %980 = vmatprep.subr.mxu0 %v1241_v6  ;;  %1071 = vmatprep.subr.mxu1 %v1243_v7 }
  0x46   :  { %981 = vmatpush3.msra.mxu0 %v1247_v8  ;;  %1072 = vmatpush3.msra.mxu1 %v1243_v7 }
  0x47   :  { %982 = vmatprep.subr.mxu0 %v1251_v9  ;;  %1073 = vmatprep.subr.mxu1 %v1253_v10 }
  0x48   :  { %983 = vmatpush3.msra.mxu0 %v1257_v11  ;;  %1074 = vmatpush3.msra.mxu1 %v1253_v10  ;;  %v1472_v10 = vld [vmem:[%s1586_s2] ss:$0 sm:$0xff]  ;;  %s1187_s2 = smov [#allocation7]  }
  0x49   :  { %984 = vmatprep.subr.mxu0 %v1261_v12  ;;  %1075 = vmatprep.subr.mxu1 %v1263_v13 }
  0x4a   :  { %985 = vmatpush3.msra.mxu0 %v1267_v14  ;;  %1076 = vmatpush3.msra.mxu1 %v1263_v13  ;;  %v1477_v13 = vld [vmem:[%s1587_s3] ss:$0 sm:$0xff]  ;;  %s885_s3 = sshll.u32 %s1187_s2, 4  ;;  %s886_s3 = int_to_ptr.vmem [resolvable:$true] %s885_s3 }
  0x4b   :  { %986 = vmatprep.subr.mxu0 %v1271_v15  ;;  %1077 = vmatprep.subr.mxu1 %v1273_v16  ;;  %s1156_s29 = scalar_lea.vmem %s886_s3, 256  ;;  %p1161_p11 = scmp.lt.s32.totalorder %s886_s3, %s886_s3 }
  0x4c   :  { %987 = vmatpush3.msra.mxu0 %v1277_v17  ;;  %1078 = vmatpush3.msra.mxu1 %v1273_v16  ;;  %p1157_p10 = scmp.ne.s32.totalorder %s886_s3, %s1156_s29  ;;  %p1162_p12 = scmp.lt.s32.totalorder %s1156_s29, %s1156_s29 }
  0x4d   :  { %988 = vmatprep.subr.mxu0 %v1281_v18  ;;  %1079 = vmatprep.subr.mxu1 %v1283_v19 }
  0x4e   :  { %989 = vmatpush3.msra.mxu0 %v1287_v20  ;;  %1080 = vmatpush3.msra.mxu1 %v1283_v19  ;;  %p1163_p13 = por %p1162_p12, %p1161_p11 }
  0x4f   :  { %990 = vmatprep.subr.mxu0 %v1291_v21  ;;  %1081 = vmatprep.subr.mxu1 %v1293_v22 }
  0x50   :  { %991 = vmatpush3.msra.mxu0 %v1297_v23  ;;  %1082 = vmatpush3.msra.mxu1 %v1293_v22  ;;  %p1164_p0 = pnand %p1163_p13, %p1157_p10 }
  0x51   :  { %992 = vmatprep.subr.mxu0 %v1301_v24  ;;  %1083 = vmatprep.subr.mxu1 %v1303_v25  ;;  %v1186_v24 = vmov 1983009808  }
  0x52   :  { %993 = vmatpush3.msra.mxu0 %v1307_v26  ;;  %1084 = vmatpush3.msra.mxu1 %v1303_v25  ;;  %v290_v25 = vunpack.c.l.s4 %v1186_v24 }
  0x53   :  { %994 = vmatprep.subr.mxu0 %v1311_v27  ;;  %1085 = vmatprep.subr.mxu1 %v1313_v28 }
  0x54   :  { %995 = vmatpush3.msra.mxu0 %v1317_v29  ;;  %1086 = vmatpush3.msra.mxu1 %v1313_v28  ;;  %v291_v26 = vunpack.c.0.s8 %v290_v25 }
  0x55   :  { %996 = vmatprep.subr.mxu0 %v1321_v30  ;;  %1087 = vmatprep.subr.mxu1 %v1323_v31 }
  0x56   :  { %997 = vmatpush3.msra.mxu0 %v1327_v32  ;;  %1088 = vmatpush3.msra.mxu1 %v1323_v31  ;;  %v1484_v28 = vsub.s32 %v291_v26, %v1349_v42 }
  0x57   :  { %998 = vmatprep.subr.mxu0 %v1331_v34  ;;  %1089 = vmatprep.subr.mxu1 %v1333_v35 }
  0x58   :  { %999 = vmatpush3.msra.mxu0 %v1337_v36  ;;  %1090 = vmatpush3.msra.mxu1 %v1333_v35 }
  0x59   :  { %1000 = vmatprep.subr.mxu0 %v1341_v37  ;;  %1091 = vmatprep.subr.mxu1 %v1343_v38 }
  0x5a   :  { %1001 = vmatpush3.msra.mxu0 %v1347_v39  ;;  %1092 = vmatpush3.msra.mxu1 %v1343_v38 }
  0x5b   :  { %1002 = vmatprep.subr.mxu0 %v1353_v43  ;;  %1093 = vmatprep.subr.mxu1 %v1355_v44 }
  0x5c   :  { %1003 = vmatpush3.msra.mxu0 %v1359_v45  ;;  %1094 = vmatpush3.msra.mxu1 %v1355_v44 }
  0x5d   :  { %1004 = vmatprep.subr.mxu0 %v1363_v46  ;;  %1095 = vmatprep.subr.mxu1 %v1365_v47 }
  0x5e   :  { %1005 = vmatpush3.msra.mxu0 %v1369_v50  ;;  %1096 = vmatpush3.msra.mxu1 %v1365_v47 }
  0x5f   :  { %1006 = vmatprep.subr.mxu0 %v1374_v53  ;;  %1097 = vmatprep.subr.mxu1 %v1376_v54 }
  0x60   :  { %1007 = vmatpush3.msra.mxu0 %v1381_v55  ;;  %574 = vmatprep.mubr.f32.mxu0 %v500_v60 }
  0x61   :  { %1098 = vmatpush3.msra.mxu1 %v1376_v54  ;;  %1099 = vmatprep.mubr.f32.mxu1 %v508_v2 }
  0x62   :  { %575 = vmatmul.mubr.f32.vlgmr.msra.gmra.mxu0 %v505_v3  ;;  %1100 = vmatmul.mubr.f32.vlgmr.msra.gmra.mxu1 %v509_v4 }
  0x63   :  { %579 = vmatprep.mubr.f32.mxu0 %v501_v61 }
  0x66   :  { %580 = vmatmul.mubr.f32.gmra.mxu0 %v504_v5 }
  0xfe   :  { %v952_v6 = vpop.f32.mrf.mxu0 }
 0x100   :  { %v1066_v7 = vpop.f32.mrf.mxu1  ;;  %v953_v8 = vpop.f32.mrf.mxu0 }
 0x101   :  { %v954_v9 = vadd.f32 %v953_v8, %v952_v6 }
 0x102   :  { %v251_v11 = vpop.f32.mrf.mxu1 }
 0x103   :  { %v252_v12 = vadd.f32 %v954_v9, %v251_v11 }
 0x104   :  { %v955_v14 = vpop.f32.mrf.mxu0 }
 0x105   :  { %v266_v15 = vmul.f32 %v1472_v10, %v252_v12 }
 0x106   :  { %v956_v16 = vpop.f32.mrf.mxu0 }
 0x107   :  { %v274_v17 = vadd.f32 %v1477_v13, %v266_v15  ;;  %v957_v18 = vadd.f32 %v956_v16, %v955_v14  ;;  %v1515_v15 = vsub.s32 0, %v1349_v42 }
 0x109   :  { %v278_v19 = vmul.f32 1.442695, %v274_v17  ;;  %v257_v20 = vadd.f32 %v1066_v7, %v957_v18  ;;  %vm276_vm2 = vcmp.gt.f32.partialorder %v274_v17, 0.0 }
 0x10b   :  { %1108 = vpow2.f32 %v278_v19  ;;  %v267_v21 = vmul.f32 %v1472_v10, %v257_v20 }
 0x10d   :  { %v275_v22 = vadd.f32 %v1477_v13, %v267_v21 }
 0x10f   :  { %v280_v23 = vmul.f32 1.442695, %v275_v22  ;;  %vm277_vm3 = vcmp.gt.f32.partialorder %v275_v22, 0.0 }
 0x111   :  { %1110 = vpow2.f32 %v280_v23 }
 0x118   :  { %v1109_v27 = vpop.eup %1108 }
 0x119   :  { %v900_v29 = vadd.f32 -1.0, %v1109_v27 }
 0x11b   :  { %v284_v30 = vsel %vm276_vm2, %v274_v17, %v900_v29 }
 0x11c   :  { %v288_v31 = vcombine.high %v284_v30, %v284_v30  ;;  %v295_v32 = vrot.slane %v284_v30, %v1484_v28 }
 0x11e   :  { %v1111_v34 = vpop.eup %1110  ;;  %v302_v35 = vrot.slane %v288_v31, %v1484_v28  ;;  %v303_v36 = vcombine.high %v295_v32, %v295_v32  ;;  %v333_v40 = vrot.slane %v295_v32, %v1488_v33  ;;  %v902_v0 = vrot.slane %v295_v32, 9 }
 0x11f   :  { %v901_v37 = vadd.f32 -1.0, %v1111_v34 }
 0x120   :  { %v1491_v38 = vcombine.high %v302_v35, %v302_v35  ;;  %v337_v39 = vrot.slane %v303_v36, %v1488_v33  ;;  %v341_v41 = vrot.slane %v302_v35, %v1488_v33  ;;  %v903_v7 = vrot.slane %v303_v36, 9 }
 0x121   :  { %v285_v43 = vsel %vm277_vm3, %v275_v22, %v901_v37  ;;  %v904_v8 = vrot.slane %v302_v35, 9  ;;  %v404_v16 = vmax.f32 %v295_v32, %v902_v0 }
 0x122   :  { %v345_v44 = vrot.slane %v1491_v38, %v1488_v33  ;;  %v305_v45 = vcombine.high %v285_v43, %v285_v43  ;;  %v312_v46 = vrot.slane %v285_v43, %v1484_v28  ;;  %v1008_v47 = vpop.f32.mrf.mxu0  ;;  %v1101_v48 = vpop.f32.mrf.mxu1  ;;  %v363_v49 = vsel %vm362_vm4, %v337_v39, %v333_v40 }
 0x123   :  { %v365_v55 = vsel %vm364_vm5, %v341_v41, %v363_v49  ;;  %v905_v17 = vrot.slane %v1491_v38, 9  ;;  %v405_v22 = vmax.f32 %v303_v36, %v903_v7  ;;  %v406_v23 = vmax.f32 %v302_v35, %v904_v8 }
 0x124   :  { %v319_v50 = vrot.slane %v305_v45, %v1484_v28  ;;  %v320_v51 = vcombine.high %v312_v46, %v312_v46  ;;  %v349_v52 = vrot.slane %v312_v46, %v1488_v33  ;;  %v1009_v53 = vpop.f32.mrf.mxu0  ;;  %v651_v56 = vpop.f32.mrf.mxu1  ;;  %v367_v61 = vsel %vm366_vm6, %v345_v44, %v365_v55 }
 0x125   :  { %v1010_v54 = vadd.f32 %v1009_v53, %v1008_v47  ;;  %v906_v18 = vrot.slane %v312_v46, 9 }
 0x126   :  { %v1011_v57 = vpop.f32.mrf.mxu0  ;;  %v321_v58 = vcombine.high %v319_v50, %v319_v50  ;;  %v353_v59 = vrot.slane %v320_v51, %v1488_v33  ;;  %v357_v60 = vrot.slane %v319_v50, %v1488_v33  ;;  %v369_v63 = vsel %vm368_vm7, %v349_v52, %v367_v61 }
 0x127   :  { %v652_v62 = vadd.f32 %v1010_v54, %v651_v56  ;;  %v907_v27 = vrot.slane %v320_v51, 9  ;;  %v908_v29 = vrot.slane %v319_v50, 9  ;;  %v408_v39 = vmax.f32 %v312_v46, %v906_v18 }
 0x128   :  { %v1012_v1 = vpop.f32.mrf.mxu0  ;;  %v361_v2 = vrot.slane %v321_v58, %v1488_v33  ;;  %v371_v3 = vsel %vm370_vm8, %v353_v59, %v369_v63  ;;  %v909_v30 = vrot.slane %v321_v58, 9 }
 0x129   :  { %v660_v4 = vmul.f32 %v1472_v10, %v652_v62  ;;  %v1013_v5 = vadd.f32 %v1012_v1, %v1011_v57  ;;  %v373_v6 = vsel %vm372_vm9, %v357_v60, %v371_v3  ;;  %v409_v44 = vmax.f32 %v320_v51, %v907_v27 }
 0x12a   :  { %v375_v9 = vsel %vm374_vm10, %v361_v2, %v373_v6  ;;  %v410_v45 = vmax.f32 %v319_v50, %v908_v29  ;;  %v411_v47 = vmax.f32 %v321_v58, %v909_v30 }
 0x12b   :  { %v662_v11 = vadd.f32 %v1477_v13, %v660_v4  ;;  %v657_v12 = vadd.f32 %v1101_v48, %v1013_v5  ;;  %v377_v14 = vrot.slane %v375_v9, 7 }
 0x12d   :  { %v666_v19 = vmul.f32 1.442695, %v662_v11  ;;  %v661_v20 = vmul.f32 %v1472_v10, %v657_v12  ;;  %v379_v21 = vsel %vm378_vm11, -inf, %v377_v14  ;;  %v407_v10 = vmax.f32 %v1491_v38, %v905_v17 }
 0x12e   :  { %v413_v24 = vcombine.high %v379_v21, %v379_v21  ;;  %v420_v25 = vrot.slane %v379_v21, %v1484_v28  ;;  %vm664_vm12 = vcmp.gt.f32.partialorder %v662_v11, 0.0 }
 0x12f   :  { %1112 = vpow2.f32 %v666_v19  ;;  %v663_v26 = vadd.f32 %v1477_v13, %v661_v20 }
 0x130   :  { %v427_v31 = vrot.slane %v413_v24, %v1484_v28  ;;  %v428_v32 = vcombine.high %v420_v25, %v420_v25  ;;  %v430_v34 = vrot.slane %v420_v25, 1  ;;  %v442_v40 = vmax.f32 %v404_v16, %v420_v25 }
 0x131   :  { %v668_v37 = vmul.f32 1.442695, %v663_v26  ;;  %vm665_vm13 = vcmp.gt.f32.partialorder %v663_v26, 0.0 }
 0x132   :  { %v429_v36 = vcombine.high %v427_v31, %v427_v31  ;;  %v431_v35 = vrot.slane %v428_v32, 1  ;;  %v432_v41 = vrot.slane %v427_v31, 1  ;;  %v443_v43 = vmax.f32 %v405_v22, %v430_v34 }
 0x133   :  { %1114 = vpow2.f32 %v668_v37  ;;  %v444_v13 = vmax.f32 %v406_v23, %v428_v32  ;;  %v446_v52 = vmax.f32 %v408_v39, %v427_v31  ;;  %v461_v54 = vrot.slane %v442_v40, %v1515_v15 }
 0x134   :  { %v433_v48 = vrot.slane %v429_v36, 1  ;;  %v445_v49 = vmax.f32 %v407_v10, %v431_v35  ;;  %v447_v53 = vmax.f32 %v409_v44, %v432_v41  ;;  %v465_v55 = vrot.slane %v443_v43, %v1515_v15 }
 0x135   :  { %v469_v38 = vrot.slane %v444_v13, %v1515_v15  ;;  %v448_v46 = vmax.f32 %v410_v45, %v429_v36  ;;  %v477_v50 = vrot.slane %v446_v52, %v1515_v15 }
 0x136   :  { %v473_v56 = vrot.slane %v445_v49, %v1515_v15  ;;  %v449_v57 = vmax.f32 %v411_v47, %v433_v48  ;;  %v490_v59 = vsel %vm362_vm4, %v465_v55, %v461_v54  ;;  %v481_v58 = vrot.slane %v447_v53, %v1515_v15 }
 0x137   :  { %v491_v51 = vsel %vm364_vm5, %v469_v38, %v490_v59  ;;  %v485_v61 = vrot.slane %v448_v46, %v1515_v15 }
 0x138   :  { %v492_v60 = vsel %vm366_vm6, %v473_v56, %v491_v51  ;;  %v489_v63 = vrot.slane %v449_v57, %v1515_v15 }
 0x139   :  { %v493_v62 = vsel %vm368_vm7, %v477_v50, %v492_v60 }
 0x13a   :  { %v494_v0 = vsel %vm370_vm8, %v481_v58, %v493_v62 }
 0x13b   :  { %v495_v2 = vsel %vm372_vm9, %v485_v61, %v494_v0 }
 0x13c   :  { %v1113_v1 = vpop.eup %1112  ;;  %v496_v4 = vsel %vm374_vm10, %v489_v63, %v495_v2 }
 0x13d   :  { %v910_v3 = vadd.f32 -1.0, %v1113_v1  ;;  %498 = vst [vmem:[#allocation7] sm:$0xff] %v496_v4 }
 0x13f   :  { %v672_v5 = vsel %vm664_vm12, %v662_v11, %v910_v3 }
 0x140   :  { %v1115_v6 = vpop.eup %1114  ;;  %v676_v7 = vcombine.high %v672_v5, %v672_v5  ;;  %v683_v8 = vrot.slane %v672_v5, %v1484_v28 }
 0x141   :  { %v911_v9 = vadd.f32 -1.0, %v1115_v6 }
 0x142   :  { %v690_v12 = vrot.slane %v676_v7, %v1484_v28  ;;  %v691_v14 = vcombine.high %v683_v8, %v683_v8  ;;  %v721_v18 = vrot.slane %v683_v8, %v1488_v33  ;;  %v912_v36 = vrot.slane %v683_v8, 9 }
 0x143   :  { %v673_v16 = vsel %vm665_vm13, %v663_v26, %v911_v9 }
 0x144   :  { %v692_v17 = vcombine.high %v690_v12, %v690_v12  ;;  %v725_v19 = vrot.slane %v691_v14, %v1488_v33  ;;  %v729_v20 = vrot.slane %v690_v12, %v1488_v33  ;;  %v693_v21 = vcombine.high %v673_v16, %v673_v16 }
 0x145   :  { %v700_v11 = vrot.slane %v673_v16, %v1484_v28  ;;  %v913_v35 = vrot.slane %v691_v14, 9  ;;  %v914_v43 = vrot.slane %v690_v12, 9  ;;  %v784_v49 = vmax.f32 %v683_v8, %v912_v36 }
 0x146   :  { %v733_v22 = vrot.slane %v692_v17, %v1488_v33  ;;  %v750_v23 = vsel %vm362_vm4, %v725_v19, %v721_v18  ;;  %v707_v24 = vrot.slane %v693_v21, %v1484_v28  ;;  %v915_v13 = vrot.slane %v692_v17, 9 }
 0x147   :  { %v708_v25 = vcombine.high %v700_v11, %v700_v11  ;;  %v737_v27 = vrot.slane %v700_v11, %v1488_v33  ;;  %v751_v26 = vsel %vm364_vm5, %v729_v20, %v750_v23  ;;  %v916_v44 = vrot.slane %v700_v11, 9 }
 0x148   :  { %v709_v29 = vcombine.high %v707_v24, %v707_v24  ;;  %v745_v31 = vrot.slane %v707_v24, %v1488_v33  ;;  %v752_v32 = vsel %vm366_vm6, %v733_v22, %v751_v26  ;;  %v918_v53 = vrot.slane %v707_v24, 9 }
 0x149   :  { %v741_v30 = vrot.slane %v708_v25, %v1488_v33  ;;  %v753_v34 = vsel %vm368_vm7, %v737_v27, %v752_v32  ;;  %v917_v52 = vrot.slane %v708_v25, 9  ;;  %v786_v56 = vmax.f32 %v690_v12, %v914_v43 }
 0x14a   :  { %v749_v37 = vrot.slane %v709_v29, %v1488_v33  ;;  %v785_v33 = vmax.f32 %v691_v14, %v913_v35  ;;  %v919_v54 = vrot.slane %v709_v29, 9  ;;  %v787_v57 = vmax.f32 %v692_v17, %v915_v13 }
 0x14b   :  { %v754_v10 = vsel %vm370_vm8, %v741_v30, %v753_v34  ;;  %v788_v59 = vmax.f32 %v700_v11, %v916_v44  ;;  %v789_v61 = vmax.f32 %v708_v25, %v917_v52  ;;  %v790_v62 = vmax.f32 %v707_v24, %v918_v53 }
 0x14c   :  { %v755_v39 = vsel %vm372_vm9, %v745_v31, %v754_v10  ;;  %v791_v0 = vmax.f32 %v709_v29, %v919_v54 }
 0x14d   :  { %v756_v40 = vsel %vm374_vm10, %v749_v37, %v755_v39 }
 0x14e   :  { %v758_v41 = vrot.slane %v756_v40, 7 }
 0x150   :  { %v759_v45 = vsel %vm378_vm11, -inf, %v758_v41 }
 0x151   :  { %v793_v47 = vcombine.high %v759_v45, %v759_v45  ;;  %v800_v48 = vrot.slane %v759_v45, %v1484_v28 }
 0x153   :  { %v807_v55 = vrot.slane %v793_v47, %v1484_v28  ;;  %v808_v38 = vcombine.high %v800_v48, %v800_v48  ;;  %v810_v46 = vrot.slane %v800_v48, 1  ;;  %v822_v50 = vmax.f32 %v784_v49, %v800_v48 }
 0x155   :  { %v809_v51 = vcombine.high %v807_v55, %v807_v55  ;;  %v811_v42 = vrot.slane %v808_v38, 1  ;;  %v812_v58 = vrot.slane %v807_v55, 1  ;;  %v823_v60 = vmax.f32 %v785_v33, %v810_v46 }
 0x156   :  { %v824_v63 = vmax.f32 %v786_v56, %v808_v38  ;;  %v826_v3 = vmax.f32 %v788_v59, %v807_v55  ;;  %v841_v28 = vrot.slane %v822_v50, %v1515_v15 }
 0x157   :  { %v813_v1 = vrot.slane %v809_v51, 1  ;;  %v825_v2 = vmax.f32 %v787_v57, %v811_v42  ;;  %v827_v4 = vmax.f32 %v789_v61, %v812_v58  ;;  %v845_v5 = vrot.slane %v823_v60, %v1515_v15 }
 0x158   :  { %v849_v6 = vrot.slane %v824_v63, %v1515_v15  ;;  %v828_v7 = vmax.f32 %v790_v62, %v809_v51  ;;  %v857_v14 = vrot.slane %v826_v3, %v1515_v15 }
 0x159   :  { %v853_v8 = vrot.slane %v825_v2, %v1515_v15  ;;  %v829_v9 = vmax.f32 %v791_v0, %v813_v1  ;;  %v870_v12 = vsel %vm362_vm4, %v845_v5, %v841_v28  ;;  %v861_v17 = vrot.slane %v827_v4, %v1515_v15 }
 0x15a   :  { %v871_v16 = vsel %vm364_vm5, %v849_v6, %v870_v12  ;;  %v865_v19 = vrot.slane %v828_v7, %v1515_v15 }
 0x15b   :  { %v872_v18 = vsel %vm366_vm6, %v853_v8, %v871_v16  ;;  %v869_v21 = vrot.slane %v829_v9, %v1515_v15 }
 0x15c   :  { %v873_v20 = vsel %vm368_vm7, %v857_v14, %v872_v18 }
 0x15d   :  { %v874_v11 = vsel %vm370_vm8, %v861_v17, %v873_v20 }
 0x15e   :  { %v875_v22 = vsel %vm372_vm9, %v865_v19, %v874_v11 }
 0x15f   :  { %v876_v23 = vsel %vm374_vm10, %v869_v21, %v875_v22 }
 0x160   :  { %879 = vst [vmem:[#allocation7 + $0x8] sm:$0xff] %v876_v23 }
 0x161   :  { %1167 = shalt.err (!%p1164_p0)
}
 0x162   :  { %891 = dma.vmem_to_hbm [thread:$0]  %s886_s3, 256, %s1588_s4, [#allocation4], %s1183_s18, %s1183_s18, %s1184_s19  }
 0x163   :  { %1180 = dma.done.wait [#allocation4], 256  }
 0x164   :  { %1181 = vsyncadd [#allocation4], 4294967040 }
 0x165   :  { %895 = vsyncpa [#allocation3], 1 }
 0x166   :  { %896 = vsyncpa [#allocation6], 1 }
 0x167   :  { %897 = vsyncpa [#allocation4], 1 }

</bundles_post_ra>
